<compile_context>
chip_gen: v7x
topology: tpu7x:2x2x1
jax: 0.10.0
libtpu: 0.0.40
codegen_flags: <defaults>
</compile_context>

<pallas_src>
import itertools
import jax
import jax.numpy as jnp
from jax.experimental import pallas as pl
from jax.experimental.pallas import tpu as pltpu


def _round_up(x, m):
    return (x + m - 1) // m * m


def _pick_hidden_tile(hp):
    for t in (512, 256, 128):
        if hp % t == 0:
            return t
    return hp


# ---------------------------------------------------------------------------
# TracedModule plumbing (Placeholder / _flatten / _unflatten equivalents)
# ---------------------------------------------------------------------------
class Placeholder:
    def __init__(self, s):
        self.s = s

    def __repr__(self):
        return self.s


HOLE = Placeholder("HOLE")


def _iter_arrays(obj):
    if isinstance(obj, (list, tuple)):
        for o in obj:
            yield from _iter_arrays(o)
    elif isinstance(obj, jnp.ndarray):
        yield obj


def _nested_map(obj):
    if isinstance(obj, (list, tuple)):
        return type(obj)(_nested_map(o) for o in obj)
    return HOLE


def _flatten(obj, params=tuple()):
    obj_vars = tuple(itertools.chain(_iter_arrays(obj), params))
    obj_struct = _nested_map(obj)
    return obj_vars, obj_struct


def _unflatten(flat, proto):
    def helper(inp, proto):
        if not isinstance(proto, (list, tuple)):
            return inp[0], inp[1:]
        res = []
        for e in proto:
            r, inp = helper(inp, e)
            res.append(r)
        return type(proto)(res), inp

    return helper(flat, proto)


# ---------------------------------------------------------------------------
# Pallas kernel: fused LSTMCell forward (single step), hidden-tiled
# ---------------------------------------------------------------------------
def lstm_cell_kernel(x_ref, h_ref, c_ref, wih_ref, whh_ref, b_ref,
                     h_out_ref, c_out_ref):
    th = c_ref.shape[-1]
    # bf16 cast in-kernel (one f32 HBM read instead of cast round-trip);
    # two MXU pushes with f32 accumulation.
    x_bf = x_ref[...].astype(jnp.bfloat16)
    h_bf = h_ref[...].astype(jnp.bfloat16)
    gates = (jnp.dot(x_bf, wih_ref[...], preferred_element_type=jnp.float32)
             + jnp.dot(h_bf, whh_ref[...], preferred_element_type=jnp.float32)
             + b_ref[0:1, :])
    # Per-tile gate layout is [i | f | g | o], each TH lanes (TH % 128 == 0):
    # the i|f sigmoid is one contiguous lane-dense EUP pass.
    sig_if = jax.nn.sigmoid(gates[:, :2 * th])
    i_g = sig_if[:, :th]
    f_g = sig_if[:, th:]
    g_g = jnp.tanh(gates[:, 2 * th:3 * th])
    o_g = jax.nn.sigmoid(gates[:, 3 * th:])
    c_new = f_g * c_ref[...] + i_g * g_g
    h_new = o_g * jnp.tanh(c_new)
    c_out_ref[...] = c_new
    h_out_ref[...] = h_new.astype(h_out_ref.dtype)


def lstm_cell_pallas(x, h, c, w_ih_k, w_hh_k, bias_k, tile_h):
    """x (B,I) f32, h/c (B,H) f32, w_ih_k (Ip,4Hp) bf16, w_hh_k (Hp,4Hp) bf16,
    bias_k (8,4Hp) f32; all kernel weights hidden-tile interleaved with tile_h.
    Returns (h_new bf16 (B,H), c_new f32 (B,H))."""
    B, I = x.shape
    H = h.shape[-1]
    Ip = w_ih_k.shape[0]
    Hp = w_hh_k.shape[0]
    TH = tile_h
    NT = Hp // TH

    # Zero-pad activations to the lane-padded K dims (no-op when aligned);
    # padded columns hit zero weight rows so they are inert.
    if Ip != I:
        x = jnp.pad(x, ((0, 0), (0, Ip - I)))
    if Hp != H:
        h = jnp.pad(h, ((0, 0), (0, Hp - H)))
        c = jnp.pad(c, ((0, 0), (0, Hp - H)))

    # Batch tile: multiple of 16 (bf16 sublane packing); 256 rows for large B
    # to feed the 2x256^2 MXU of v6e/v7x at full height.
    TB = 256 if B > 256 else _round_up(B, 16)
    Bp = _round_up(B, TB)
    if Bp != B:
        x = jnp.pad(x, ((0, Bp - B), (0, 0)))
        h = jnp.pad(h, ((0, Bp - B), (0, 0)))
        c = jnp.pad(c, ((0, Bp - B), (0, 0)))

    h_new, c_new = pl.pallas_call(
        lstm_cell_kernel,
        out_shape=(jax.ShapeDtypeStruct((Bp, Hp), jnp.bfloat16),   # h (bf16)
                   jax.ShapeDtypeStruct((Bp, Hp), jnp.float32)),   # c (f32)
        grid=(Bp // TB, NT),
        in_specs=[
            # x / h: constant block index along the hidden-tile axis -> DMA'd
            # once per batch tile, reused across all NT steps.
            pl.BlockSpec((TB, Ip), lambda b, j: (b, 0)),
            pl.BlockSpec((TB, Hp), lambda b, j: (b, 0)),
            pl.BlockSpec((TB, TH), lambda b, j: (b, j)),
            # Weight / bias tiles change per j -> pipelined weight DMA, only
            # 2 tiles resident in VMEM at a time.
            pl.BlockSpec((Ip, 4 * TH), lambda b, j: (0, j)),
            pl.BlockSpec((Hp, 4 * TH), lambda b, j: (0, j)),
            pl.BlockSpec((8, 4 * TH), lambda b, j: (0, j)),
        ],
        out_specs=(pl.BlockSpec((TB, TH), lambda b, j: (b, j)),
                   pl.BlockSpec((TB, TH), lambda b, j: (b, j))),
        compiler_params=pltpu.CompilerParams(
            # Both axes are independent -> megacore may shard either the batch
            # or the hidden/gate axis (the latter avoids duplicating weight
            # DMA for small-batch inference on v7x).
            dimension_semantics=("parallel", "parallel"),
            # Above the scoped default, below v7x's 64 MiB physical VMEM.
            vmem_limit_bytes=48 * 1024 * 1024,
        ),
    )(x, h, c, w_ih_k, w_hh_k, bias_k)
    return h_new[:B, :H], c_new[:B, :H]


# ---------------------------------------------------------------------------
# Inner module (nn.LSTMCell analog) and TracedModule
# ---------------------------------------------------------------------------
class LSTMCell:
    def __init__(self, input_size, hidden_size, key):
        k1, k2, k3, k4 = jax.random.split(key, 4)
        H = hidden_size
        s = 1.0 / jnp.sqrt(H)
        self.input_size = input_size
        self.hidden_size = H
        # PyTorch-convention params (gate order [i,f,g,o]), stored transposed:
        # (in, 4H) / (H, 4H); bias combined b_ih + b_hh.
        self.w_ih_t = jax.random.uniform(k1, (input_size, 4 * H),
                                         jnp.float32, -s, s)
        self.w_hh_t = jax.random.uniform(k2, (H, 4 * H), jnp.float32, -s, s)
        self.bias = (jax.random.uniform(k3, (1, 4 * H), jnp.float32, -s, s)
                     + jax.random.uniform(k4, (1, 4 * H), jnp.float32, -s, s))

        # Kernel weights: lane-padded, bf16, hidden-tile interleaved so that
        # one (K, 4*TH) column slab holds [i_j | f_j | g_j | o_j] for hidden
        # chunk j.  Rows zero-padded to the lane-padded K dims.
        Hp = _round_up(H, 128)
        Ip = _round_up(input_size, 128)
        TH = _pick_hidden_tile(Hp)
        NT = Hp // TH
        self._Hp, self._Ip, self.tile_h = Hp, Ip, TH

        def interleave(w, rows, rows_p):
            w = w.reshape(rows, 4, H)
            w = jnp.pad(w, ((0, rows_p - rows), (0, 0), (0, Hp - H)))
            w = w.reshape(rows_p, 4, NT, TH).transpose(0, 2, 1, 3)
            return w.reshape(rows_p, NT * 4 * TH)

        self.w_ih_k = interleave(self.w_ih_t, input_size, Ip).astype(jnp.bfloat16)
        self.w_hh_k = interleave(self.w_hh_t, H, Hp).astype(jnp.bfloat16)
        # Bias pre-broadcast to 8 sublanes so its VMEM block is sublane-dense.
        self.bias_k = jnp.tile(interleave(self.bias, 1, 1), (8, 1))

    def state_dict_values(self):
        return (self.w_ih_t, self.w_hh_t, self.bias)

    def __call__(self, x, hidden):
        h, c = hidden
        # TODO(synk): if the cell is ever driven over a time sequence, move the
        # recurrence inside one pallas_call (time as an "arbitrary" grid axis,
        # VMEM-resident weights, x@W_ih precomputed for all steps, h/c state
        # via input_output_aliases).
        return lstm_cell_pallas(x, h, c, self.w_ih_k, self.w_hh_k,
                                self.bias_k, self.tile_h)


class TracedModule:
    """Pallas-backed analog of torch.jit.TracedModule."""

    def __init__(self, inner, nderivs=0):
        self.inner = inner
        self.nderivs = nderivs

    def forward(self, *args, **kwargs):
        kw_items = sorted(kwargs.items())
        in_vars, in_struct = _flatten((args, tuple(kw_items)),
                                      self.inner.state_dict_values())
        # TODO(synk): torch._C._tracer_enter/_tracer_exit IR capture has no
        # Pallas equivalent; we return a Placeholder in place of the trace.
        out = self.inner(*args, **kwargs)
        out_vars, out_struct = _flatten(out)
        trace = Placeholder("TRACE")
        unflat_out, unmatched = _unflatten(out_vars, out_struct)
        assert len(unmatched) == 0
        return trace, unflat_out

    __call__ = forward


def trace(f, args=tuple(), kwargs=None, nderivs=0):
    if kwargs is None:
        kwargs = {}
    if not isinstance(args, tuple):
        args = (args,)
    return TracedModule(f, nderivs=nderivs)(*args, **kwargs)


# ---------------------------------------------------------------------------
if __name__ == "__main__":
    key = jax.random.PRNGKey(0)
    kx, kh, kc, kp = jax.random.split(key, 4)

    B, I, H = 8, 128, 128  # batch, input_size, hidden_size (lane-aligned)
    x = jax.random.normal(kx, (B, I), jnp.float32)
    h0 = jax.random.normal(kh, (B, H), jnp.float32)
    c0 = jax.random.normal(kc, (B, H), jnp.float32)

    cell = LSTMCell(I, H, kp)
    tr, (h1, c1) = trace(cell, (x, (h0, c0)))
    jax.block_until_ready((h1, c1))

    # Pure-JAX reference of the LSTMCell hot path, using the same bf16-rounded
    # matmul operands (f32 accumulation) the kernel uses.
    w_ih = cell.w_ih_t.astype(jnp.bfloat16).astype(jnp.float32)
    w_hh = cell.w_hh_t.astype(jnp.bfloat16).astype(jnp.float32)
    xb = x.astype(jnp.bfloat16).astype(jnp.float32)
    hb = h0.astype(jnp.bfloat16).astype(jnp.float32)
    gates = xb @ w_ih + hb @ w_hh + cell.bias
    i_r = jax.nn.sigmoid(gates[:, 0 * H:1 * H])
    f_r = jax.nn.sigmoid(gates[:, 1 * H:2 * H])
    g_r = jnp.tanh(gates[:, 2 * H:3 * H])
    o_r = jax.nn.sigmoid(gates[:, 3 * H:4 * H])
    c_ref = f_r * c0 + i_r * g_r
    h_ref = o_r * jnp.tanh(c_ref)

    assert h1.shape == (B, H) and c1.shape == (B, H)
    assert c1.dtype == jnp.float32 and h1.dtype == jnp.bfloat16
    assert jnp.allclose(h1.astype(jnp.float32), h_ref, atol=2e-2, rtol=2e-2), "h mismatch"
    assert jnp.allclose(c1, c_ref, atol=1e-2, rtol=1e-2), "c mismatch"

    print("KERNEL_OK")
</pallas_src>

<mosaic_0001>
module attributes {stable_mosaic.version = 11 : i64} {
  func.func @lstm_cell_kernel(%arg0: i32, %arg1: i32, %arg2: memref<16x128xf32, #tpu.memory_space<vmem>>, %arg3: memref<16x128xf32, #tpu.memory_space<vmem>>, %arg4: memref<16x128xf32, #tpu.memory_space<vmem>>, %arg5: memref<128x512xbf16, #tpu.memory_space<vmem>>, %arg6: memref<128x512xbf16, #tpu.memory_space<vmem>>, %arg7: memref<8x512xf32, #tpu.memory_space<vmem>>, %arg8: memref<16x128xbf16, #tpu.memory_space<vmem>>, %arg9: memref<16x128xf32, #tpu.memory_space<vmem>>) attributes {dimension_semantics = [#tpu.dimension_semantics<parallel>, #tpu.dimension_semantics<parallel>], iteration_bounds = array<i64: 1, 1>, scalar_prefetch = 0 : i64, scratch_operands = 0 : i64, tpu.core_type = #tpu.core_type<tc>, window_params = [{transform_indices = @transform_0, window_bounds = array<i64: 16, 128>}, {transform_indices = @transform_1, window_bounds = array<i64: 16, 128>}, {transform_indices = @transform_2, window_bounds = array<i64: 16, 128>}, {transform_indices = @transform_3, window_bounds = array<i64: 128, 512>}, {transform_indices = @transform_4, window_bounds = array<i64: 128, 512>}, {transform_indices = @transform_5, window_bounds = array<i64: 8, 512>}, {transform_indices = @transform_6, window_bounds = array<i64: 16, 128>}, {transform_indices = @transform_7, window_bounds = array<i64: 16, 128>}]} {
    %c0 = arith.constant 0 : index
    %c0_0 = arith.constant 0 : index
    %0 = vector.load %arg2[%c0, %c0_0] : memref<16x128xf32, #tpu.memory_space<vmem>>, vector<16x128xf32>
    %1 = arith.truncf %0 : vector<16x128xf32> to vector<16x128xbf16>
    %c0_1 = arith.constant 0 : index
    %c0_2 = arith.constant 0 : index
    %2 = vector.load %arg3[%c0_1, %c0_2] : memref<16x128xf32, #tpu.memory_space<vmem>>, vector<16x128xf32>
    %3 = arith.truncf %2 : vector<16x128xf32> to vector<16x128xbf16>
    %c0_3 = arith.constant 0 : index
    %c0_4 = arith.constant 0 : index
    %4 = vector.load %arg5[%c0_3, %c0_4] : memref<128x512xbf16, #tpu.memory_space<vmem>>, vector<128x512xbf16>
    %cst = arith.constant dense<0.000000e+00> : vector<16x512xf32>
    %5 = tpu.matmul %1, %4, %cst {dimension_numbers = #tpu.dot_dimension_numbers<[1], [0], [0], [1], [0, 0, 1, 1], [], []>} : vector<16x128xbf16>, vector<128x512xbf16>, vector<16x512xf32> -> vector<16x512xf32>
    %c0_5 = arith.constant 0 : index
    %c0_6 = arith.constant 0 : index
    %6 = vector.load %arg6[%c0_5, %c0_6] : memref<128x512xbf16, #tpu.memory_space<vmem>>, vector<128x512xbf16>
    %cst_7 = arith.constant dense<0.000000e+00> : vector<16x512xf32>
    %7 = tpu.matmul %3, %6, %cst_7 {dimension_numbers = #tpu.dot_dimension_numbers<[1], [0], [0], [1], [0, 0, 1, 1], [], []>} : vector<16x128xbf16>, vector<128x512xbf16>, vector<16x512xf32> -> vector<16x512xf32>
    %8 = arith.addf %5, %7 : vector<16x512xf32>
    %c0_8 = arith.constant 0 : index
    %c0_9 = arith.constant 0 : index
    %9 = vector.load %arg7[%c0_8, %c0_9] : memref<8x512xf32, #tpu.memory_space<vmem>>, vector<1x512xf32>
    %10 = vector.broadcast %9 : vector<1x512xf32> to vector<16x512xf32>
    %11 = arith.addf %8, %10 : vector<16x512xf32>
    %12 = vector.extract_strided_slice %11 {offsets = [0, 0], sizes = [16, 256], strides = [1, 1]} : vector<16x512xf32> to vector<16x256xf32>
    %13 = arith.negf %12 : vector<16x256xf32>
    %14 = math.exp %13 : vector<16x256xf32>
    %cst_10 = arith.constant 1.000000e+00 : f32
    %15 = vector.broadcast %cst_10 : f32 to vector<16x256xf32>
    %16 = arith.addf %15, %14 : vector<16x256xf32>
    %17 = arith.divf %15, %16 : vector<16x256xf32>
    %18 = vector.extract_strided_slice %17 {offsets = [0, 0], sizes = [16, 128], strides = [1, 1]} : vector<16x256xf32> to vector<16x128xf32>
    %19 = vector.extract_strided_slice %17 {offsets = [0, 128], sizes = [16, 128], strides = [1, 1]} : vector<16x256xf32> to vector<16x128xf32>
    %20 = vector.extract_strided_slice %11 {offsets = [0, 256], sizes = [16, 128], strides = [1, 1]} : vector<16x512xf32> to vector<16x128xf32>
    %21 = math.tanh %20 : vector<16x128xf32>
    %22 = vector.extract_strided_slice %11 {offsets = [0, 384], sizes = [16, 128], strides = [1, 1]} : vector<16x512xf32> to vector<16x128xf32>
    %23 = arith.negf %22 : vector<16x128xf32>
    %24 = math.exp %23 : vector<16x128xf32>
    %cst_11 = arith.constant 1.000000e+00 : f32
    %25 = vector.broadcast %cst_11 : f32 to vector<16x128xf32>
    %26 = arith.addf %25, %24 : vector<16x128xf32>
    %27 = arith.divf %25, %26 : vector<16x128xf32>
    %c0_12 = arith.constant 0 : index
    %c0_13 = arith.constant 0 : index
    %28 = vector.load %arg4[%c0_12, %c0_13] : memref<16x128xf32, #tpu.memory_space<vmem>>, vector<16x128xf32>
    %29 = arith.mulf %19, %28 : vector<16x128xf32>
    %30 = arith.mulf %18, %21 : vector<16x128xf32>
    %31 = arith.addf %29, %30 : vector<16x128xf32>
    %32 = math.tanh %31 : vector<16x128xf32>
    %33 = arith.mulf %27, %32 : vector<16x128xf32>
    %c0_14 = arith.constant 0 : index
    %c0_15 = arith.constant 0 : index
    %34 = vector.load %arg9[%c0_14, %c0_15] : memref<16x128xf32, #tpu.memory_space<vmem>>, vector<16x128xf32>
    tpu.vector_store %arg9[%c0_14, %c0_15], %31 {strides = array<i32>} : memref<16x128xf32, #tpu.memory_space<vmem>>, vector<16x128xf32>,
    %35 = arith.truncf %33 : vector<16x128xf32> to vector<16x128xbf16>
    %c0_16 = arith.constant 0 : index
    %c0_17 = arith.constant 0 : index
    %36 = vector.load %arg8[%c0_16, %c0_17] : memref<16x128xbf16, #tpu.memory_space<vmem>>, vector<16x128xbf16>
    tpu.vector_store %arg8[%c0_16, %c0_17], %35 {strides = array<i32>} : memref<16x128xbf16, #tpu.memory_space<vmem>>, vector<16x128xbf16>,
    return
  }
  func.func @transform_0(%arg0: i32, %arg1: i32) -> (i32, i32) {
    %c0_i32 = arith.constant 0 : i32
    %c0_i32_0 = arith.constant 0 : i32
    return %arg0, %c0_i32 : i32, i32
  }
  func.func @transform_1(%arg0: i32, %arg1: i32) -> (i32, i32) {
    %c0_i32 = arith.constant 0 : i32
    %c0_i32_0 = arith.constant 0 : i32
    return %arg0, %c0_i32 : i32, i32
  }
  func.func @transform_2(%arg0: i32, %arg1: i32) -> (i32, i32) {
    %c0_i32 = arith.constant 0 : i32
    return %arg0, %arg1 : i32, i32
  }
  func.func @transform_3(%arg0: i32, %arg1: i32) -> (i32, i32) {
    %c0_i32 = arith.constant 0 : i32
    %c0_i32_0 = arith.constant 0 : i32
    return %c0_i32, %arg1 : i32, i32
  }
  func.func @transform_4(%arg0: i32, %arg1: i32) -> (i32, i32) {
    %c0_i32 = arith.constant 0 : i32
    %c0_i32_0 = arith.constant 0 : i32
    return %c0_i32, %arg1 : i32, i32
  }
  func.func @transform_5(%arg0: i32, %arg1: i32) -> (i32, i32) {
    %c0_i32 = arith.constant 0 : i32
    %c0_i32_0 = arith.constant 0 : i32
    return %c0_i32, %arg1 : i32, i32
  }
  func.func @transform_6(%arg0: i32, %arg1: i32) -> (i32, i32) {
    %c0_i32 = arith.constant 0 : i32
    return %arg0, %arg1 : i32, i32
  }
  func.func @transform_7(%arg0: i32, %arg1: i32) -> (i32, i32) {
    %c0_i32 = arith.constant 0 : i32
    return %arg0, %arg1 : i32, i32
  }
}

</mosaic_0001>

<bundles_post_ra>
// kernel: tpu_custom_call.1
= control target key start
LH: loop header
LB: loop body
LE: loop exit
PB: predicated region body
PF: predicated region fallthrough
CT: control target
= control target key end

     0   :  { %13 = vsyncpa [#allocation3], 0  ;;  %s1403_s0 = inlined_call_operand.hbm [shape: f32[16,128], index: 0, kind: input, shape index: {}]   ;;  %s1404_s1 = inlined_call_operand.hbm [shape: f32[16,128], index: 1, kind: input, shape index: {}]   ;;  %s1405_s2 = inlined_call_operand.hbm [shape: f32[16,128], index: 2, kind: input, shape index: {}]   ;;  %s1406_s3 = inlined_call_operand.hbm [shape: bf16[128,512], index: 3, kind: input, shape index: {}]   ;;  %s1407_s4 = inlined_call_operand.hbm [shape: bf16[128,512], index: 4, kind: input, shape index: {}]   ;;  %s1408_s5 = inlined_call_operand.hbm [shape: f32[8,512], index: 5, kind: input, shape index: {}]   ;;  %s1409_s6 = inlined_call_operand.hbm [shape: bf16[16,128], index: 6, kind: output, shape index: {0}]   ;;  %s1410_s7 = inlined_call_operand.hbm [shape: f32[16,128], index: 7, kind: output, shape index: {1}]  }
   0x1   :  { %14 = vsyncpa [#allocation6], 0 }
   0x2   :  { %15 = vsyncpa [#allocation9], 0 }
   0x3   :  { %16 = vsyncpa [#allocation12], 0 }
   0x4   :  { %17 = vsyncpa [#allocation4], 0 }
   0x5   :  { %18 = vsyncpa [#allocation15], 0  ;;  %s1216_s24 = smov [#allocation5]   ;;  %s1217_s26 = smov [#allocation8]  }
   0x6   :  { %s36_s25 = sshll.u32 %s1216_s24, 4  ;;  %s60_s27 = sshll.u32 %s1217_s26, 4  ;;  %s37_s25 = int_to_ptr.vmem [resolvable:$true] %s36_s25  ;;  %s1271_s27 = int_to_ptr.vmem [resolvable:$true] %s60_s27 }
   0x7   :  { %s1028_s30 = scalar_lea.hbm %s1404_s1, 256 }
   0x8   :  { %p1029_p0 = scmp.ne.s32.totalorder %s1404_s1, %s1028_s30  ;;  %p1032_p1 = scmp.lt.u32.totalorder %s1028_s30, %s1404_s1 }
   0xa   :  { %p1034_p2 = pnand %p1032_p1, %p1029_p0 }
   0xc   :  { %1037 = shalt.err (!%p1034_p2)
}
   0xd   :  { %s1038_s12 = scalar_lea.vmem %s37_s25, 256  ;;  %p1043_p4 = scmp.lt.s32.totalorder %s37_s25, %s37_s25 }
   0xe   :  { %p1039_p3 = scmp.ne.s32.totalorder %s37_s25, %s1038_s12  ;;  %p1044_p5 = scmp.lt.s32.totalorder %s1038_s12, %s1038_s12 }
  0x10   :  { %p1045_p6 = por %p1044_p5, %p1043_p4 }
  0x12   :  { %p1046_p7 = pnand %p1045_p6, %p1039_p3 }
  0x14   :  { %1049 = shalt.err (!%p1046_p7)
}
  0x15   :  { %s1218_s13 = smov 128   ;;  %s1219_s14 = smov 8  }
  0x16   :  { %42 = dma.hbm_to_vmem [thread:$0]  %s1404_s1, 256, %s37_s25, [#allocation6], %s1218_s13, %s1218_s13, %s1219_s14  }
  0x17   :  { %s1050_s19 = scalar_lea.hbm %s1406_s3, 4096 }
  0x18   :  { %p1051_p8 = scmp.ne.s32.totalorder %s1406_s3, %s1050_s19  ;;  %p1054_p9 = scmp.lt.u32.totalorder %s1050_s19, %s1406_s3 }
  0x1a   :  { %p1056_p10 = pnand %p1054_p9, %p1051_p8 }
  0x1c   :  { %1059 = shalt.err (!%p1056_p10)
}
  0x1d   :  { %s1060_s24 = scalar_lea.vmem %s1271_s27, 4096  ;;  %p1065_p12 = scmp.lt.s32.totalorder %s1271_s27, %s1271_s27 }
  0x1e   :  { %p1061_p11 = scmp.ne.s32.totalorder %s1271_s27, %s1060_s24  ;;  %p1066_p13 = scmp.lt.s32.totalorder %s1060_s24, %s1060_s24 }
  0x20   :  { %p1067_p0 = por %p1066_p13, %p1065_p12 }
  0x22   :  { %p1068_p1 = pnand %p1067_p0, %p1061_p11 }
  0x24   :  { %1071 = shalt.err (!%p1068_p1)
}
  0x25   :  { %s1220_s1 = smov 256   ;;  %s1221_s25 = smov 16  }
  0x26   :  { %66 = dma.hbm_to_vmem [thread:$0]  %s1406_s3, 4096, %s1271_s27, [#allocation9], %s1220_s1, %s1220_s1, %s1221_s25  }
  0x27   :  { %s1222_s29 = smov [#allocation2]   ;;  %s1223_s8 = smov [#allocation7]  }
  0x28   :  { %s24_s30 = sshll.u32 %s1222_s29, 4  ;;  %s48_s9 = sshll.u32 %s1223_s8, 4  ;;  %s25_s30 = int_to_ptr.vmem [resolvable:$true] %s24_s30  ;;  %s1308_s9 = int_to_ptr.vmem [resolvable:$true] %s48_s9 }
  0x29   :  { %s1072_s12 = scalar_lea.hbm %s1403_s0, 256 }
  0x2a   :  { %p1073_p2 = scmp.ne.s32.totalorder %s1403_s0, %s1072_s12  ;;  %p1076_p3 = scmp.lt.u32.totalorder %s1072_s12, %s1403_s0 }
  0x2c   :  { %p1078_p4 = pnand %p1076_p3, %p1073_p2 }
  0x2e   :  { %1081 = shalt.err (!%p1078_p4)
}
  0x2f   :  { %s1082_s3 = scalar_lea.vmem %s25_s30, 256  ;;  %p1087_p6 = scmp.lt.s32.totalorder %s25_s30, %s25_s30 }
  0x30   :  { %p1083_p5 = scmp.ne.s32.totalorder %s25_s30, %s1082_s3  ;;  %p1088_p7 = scmp.lt.s32.totalorder %s1082_s3, %s1082_s3 }
  0x32   :  { %p1089_p8 = por %p1088_p7, %p1087_p6 }
  0x34   :  { %p1090_p9 = pnand %p1089_p8, %p1083_p5 }
  0x36   :  { %1093 = shalt.err (!%p1090_p9)
}
  0x37   :  { %30 = dma.hbm_to_vmem [thread:$0]  %s1403_s0, 256, %s25_s30, [#allocation3], %s1218_s13, %s1218_s13, %s1219_s14  }
  0x38   :  { %s1094_s22 = scalar_lea.hbm %s1405_s2, 256 }
  0x39   :  { %p1095_p10 = scmp.ne.s32.totalorder %s1405_s2, %s1094_s22  ;;  %p1098_p11 = scmp.lt.u32.totalorder %s1094_s22, %s1405_s2 }
  0x3b   :  { %p1100_p12 = pnand %p1098_p11, %p1095_p10 }
  0x3d   :  { %1103 = shalt.err (!%p1100_p12)
}
  0x3e   :  { %s1104_s29 = scalar_lea.vmem %s1308_s9, 256  ;;  %p1109_p0 = scmp.lt.s32.totalorder %s1308_s9, %s1308_s9 }
  0x3f   :  { %p1105_p13 = scmp.ne.s32.totalorder %s1308_s9, %s1104_s29  ;;  %p1110_p1 = scmp.lt.s32.totalorder %s1104_s29, %s1104_s29 }
  0x41   :  { %p1111_p2 = por %p1110_p1, %p1109_p0 }
  0x43   :  { %p1112_p3 = pnand %p1111_p2, %p1105_p13 }
  0x45   :  { %1115 = shalt.err (!%p1112_p3)
}
  0x46   :  { %54 = dma.hbm_to_vmem [thread:$0]  %s1405_s2, 256, %s1308_s9, [#allocation6], %s1218_s13, %s1218_s13, %s1219_s14  }
  0x47   :  { %s1224_s8 = smov [#allocation10]   ;;  %s1225_s11 = smov [#allocation11]  }
  0x48   :  { %s72_s10 = sshll.u32 %s1224_s8, 4  ;;  %s85_s12 = sshll.u32 %s1225_s11, 4  ;;  %s73_s10 = int_to_ptr.vmem [resolvable:$true] %s72_s10  ;;  %s86_s12 = int_to_ptr.vmem [resolvable:$true] %s85_s12 }
  0x49   :  { %s1116_s17 = scalar_lea.hbm %s1407_s4, 4096 }
  0x4a   :  { %p1117_p4 = scmp.ne.s32.totalorder %s1407_s4, %s1116_s17  ;;  %p1120_p5 = scmp.lt.u32.totalorder %s1116_s17, %s1407_s4 }
  0x4c   :  { %p1122_p6 = pnand %p1120_p5, %p1117_p4 }
  0x4e   :  { %1125 = shalt.err (!%p1122_p6)
}
  0x4f   :  { %s1126_s2 = scalar_lea.vmem %s73_s10, 4096  ;;  %p1131_p8 = scmp.lt.s32.totalorder %s73_s10, %s73_s10 }
  0x50   :  { %p1127_p7 = scmp.ne.s32.totalorder %s73_s10, %s1126_s2  ;;  %p1132_p9 = scmp.lt.s32.totalorder %s1126_s2, %s1126_s2 }
  0x52   :  { %p1133_p10 = por %p1132_p9, %p1131_p8 }
  0x54   :  { %p1134_p11 = pnand %p1133_p10, %p1127_p7 }
  0x56   :  { %1137 = shalt.err (!%p1134_p11)
}
  0x57   :  { %78 = dma.hbm_to_vmem [thread:$0]  %s1407_s4, 4096, %s73_s10, [#allocation9], %s1220_s1, %s1220_s1, %s1221_s25  }
  0x58   :  { %s1138_s23 = scalar_lea.hbm %s1408_s5, 512 }
  0x59   :  { %p1139_p12 = scmp.ne.s32.totalorder %s1408_s5, %s1138_s23  ;;  %p1142_p13 = scmp.lt.u32.totalorder %s1138_s23, %s1408_s5 }
  0x5b   :  { %p1144_p0 = pnand %p1142_p13, %p1139_p12 }
  0x5d   :  { %1147 = shalt.err (!%p1144_p0)
}
  0x5e   :  { %s1148_s0 = scalar_lea.vmem %s86_s12, 512  ;;  %p1153_p2 = scmp.lt.s32.totalorder %s86_s12, %s86_s12 }
  0x5f   :  { %p1149_p1 = scmp.ne.s32.totalorder %s86_s12, %s1148_s0  ;;  %p1154_p3 = scmp.lt.s32.totalorder %s1148_s0, %s1148_s0 }
  0x61   :  { %p1155_p4 = por %p1154_p3, %p1153_p2 }
  0x63   :  { %p1156_p5 = pnand %p1155_p4, %p1149_p1 }
  0x65   :  { %1159 = shalt.err (!%p1156_p5)
}
  0x66   :  { %88 = dma.hbm_to_vmem [thread:$0]  %s1408_s5, 512, %s86_s12, [#allocation12]  }
  0x67   :  { %1204 = dma.done.wait [#allocation3], 256  }
  0x68   :  { %1205 = vsyncadd [#allocation3], 4294967040 }
  0x69   :  { %1206 = dma.done.wait [#allocation6], 512  }
  0x6a   :  { %1207 = vsyncadd [#allocation6], 4294966784 }
  0x6b   :  { %1208 = dma.done.wait [#allocation9], 8192  }
  0x6c   :  { %1209 = vsyncadd [#allocation9], 4294959104 }
  0x6d   :  { %1210 = dma.done.wait [#allocation12], 512  }
  0x6e   :  { %1211 = vsyncadd [#allocation12], 4294966784  ;;  %v1226_v0 = vmov 0   ;;  %v900_v1 = vld [vmem:[#allocation10 + $0x4] ss:$16 sps:$4 sm:$0xff]   ;;  %v112_v34 = vld [vmem:[#allocation5 + $0x8] sm:$0xff] }
  0x6f   :  { %370 = vmatprep.mubr.bf16.mxu0 %v1226_v0  ;;  %413 = vmatprep.mubr.bf16.mxu1 %v1226_v0  ;;  %v902_v2 = vld [vmem:[#allocation10 + $0xc] ss:$16 sps:$4 sm:$0xff]   ;;  %v904_v3 = vld [vmem:[#allocation10] ss:$16 sps:$4 sm:$0xff]   ;;  %v905_v4 = vld [vmem:[#allocation10 + $0x8] ss:$16 sps:$4 sm:$0xff]  }
  0x70   :  { %338 = vmatprep.subr.bf16.mxu0 %v900_v1  ;;  %381 = vmatprep.subr.bf16.mxu1 %v902_v2  ;;  %v906_v5 = vld [vmem:[#allocation10 + $0x24] ss:$16 sps:$4 sm:$0xff]   ;;  %v908_v6 = vld [vmem:[#allocation10 + $0x2c] ss:$16 sps:$4 sm:$0xff]   ;;  %v910_v7 = vld [vmem:[#allocation10 + $0x20] ss:$16 sps:$4 sm:$0xff]  }
  0x71   :  { %339 = vmatpush1.bf16.msra.mxu0 %v904_v3  ;;  %382 = vmatpush1.bf16.msra.mxu1 %v905_v4  ;;  %v911_v8 = vld [vmem:[#allocation10 + $0x28] ss:$16 sps:$4 sm:$0xff]   ;;  %v912_v9 = vld [vmem:[#allocation10 + $0x44] ss:$16 sps:$4 sm:$0xff]   ;;  %v914_v10 = vld [vmem:[#allocation10 + $0x4c] ss:$16 sps:$4 sm:$0xff]  }
  0x72   :  { %340 = vmatprep.subr.bf16.mxu0 %v906_v5  ;;  %383 = vmatprep.subr.bf16.mxu1 %v908_v6  ;;  %v916_v11 = vld [vmem:[#allocation10 + $0x40] ss:$16 sps:$4 sm:$0xff]   ;;  %v917_v12 = vld [vmem:[#allocation10 + $0x48] ss:$16 sps:$4 sm:$0xff]   ;;  %v918_v13 = vld [vmem:[#allocation10 + $0x64] ss:$16 sps:$4 sm:$0xff]  }
  0x73   :  { %v920_v14 = vld [vmem:[#allocation10 + $0x6c] ss:$16 sps:$4 sm:$0xff]   ;;  %v922_v15 = vld [vmem:[#allocation10 + $0x60] ss:$16 sps:$4 sm:$0xff]   ;;  %v923_v16 = vld [vmem:[#allocation10 + $0x68] ss:$16 sps:$4 sm:$0xff]  }
  0x74   :  { %v924_v17 = vld [vmem:[#allocation10 + $0x84] ss:$16 sps:$4 sm:$0xff]   ;;  %v926_v18 = vld [vmem:[#allocation10 + $0x8c] ss:$16 sps:$4 sm:$0xff]   ;;  %v928_v19 = vld [vmem:[#allocation10 + $0x80] ss:$16 sps:$4 sm:$0xff]  }
  0x75   :  { %341 = vmatpush1.bf16.msra.mxu0 %v910_v7  ;;  %384 = vmatpush1.bf16.msra.mxu1 %v911_v8  ;;  %v929_v20 = vld [vmem:[#allocation10 + $0x88] ss:$16 sps:$4 sm:$0xff]   ;;  %v930_v21 = vld [vmem:[#allocation10 + $0xa4] ss:$16 sps:$4 sm:$0xff]   ;;  %v932_v22 = vld [vmem:[#allocation10 + $0xac] ss:$16 sps:$4 sm:$0xff]   ;;  %v672_v7 = vlaneseq }
  0x76   :  { %342 = vmatprep.subr.bf16.mxu0 %v912_v9  ;;  %385 = vmatprep.subr.bf16.mxu1 %v914_v10  ;;  %v934_v23 = vld [vmem:[#allocation10 + $0xa0] ss:$16 sps:$4 sm:$0xff]   ;;  %v935_v24 = vld [vmem:[#allocation10 + $0xa8] ss:$16 sps:$4 sm:$0xff]   ;;  %v936_v25 = vld [vmem:[#allocation10 + $0xc4] ss:$16 sps:$4 sm:$0xff]  }
  0x77   :  { %v938_v26 = vld [vmem:[#allocation10 + $0xcc] ss:$16 sps:$4 sm:$0xff]   ;;  %v940_v27 = vld [vmem:[#allocation10 + $0xc0] ss:$16 sps:$4 sm:$0xff]   ;;  %v941_v28 = vld [vmem:[#allocation10 + $0xc8] ss:$16 sps:$4 sm:$0xff]  }
  0x78   :  { %v942_v29 = vld [vmem:[#allocation10 + $0xe4] ss:$16 sps:$4 sm:$0xff]   ;;  %v944_v30 = vld [vmem:[#allocation10 + $0xec] ss:$16 sps:$4 sm:$0xff]   ;;  %v946_v31 = vld [vmem:[#allocation10 + $0xe0] ss:$16 sps:$4 sm:$0xff]  }
  0x79   :  { %343 = vmatpush1.bf16.msra.mxu0 %v916_v11  ;;  %386 = vmatpush1.bf16.msra.mxu1 %v917_v12  ;;  %v947_v32 = vld [vmem:[#allocation10 + $0xe8] ss:$16 sps:$4 sm:$0xff]   ;;  %v111_v33 = vld [vmem:[#allocation5] sm:$0xff]  ;;  %v953_v36 = vld [vmem:[#allocation8 + $0xc] ss:$16 sps:$4 sm:$0xff]   ;;  %v673_v8 = vshrl.u32 %v672_v7, 7 }
  0x7a   :  { %344 = vmatprep.subr.bf16.mxu0 %v918_v13  ;;  %387 = vmatprep.subr.bf16.mxu1 %v920_v14  ;;  %v950_v35 = vld [vmem:[#allocation8 + $0x4] ss:$16 sps:$4 sm:$0xff]   ;;  %v113_v37 = vpack.c.bf16 %v112_v34, %v111_v33  ;;  %v948_v38 = vld [vmem:[#allocation8] ss:$16 sps:$4 sm:$0xff]   ;;  %v951_v39 = vld [vmem:[#allocation8 + $0x8] ss:$16 sps:$4 sm:$0xff]  }
  0x7b   :  { %v956_v40 = vld [vmem:[#allocation8 + $0x24] ss:$16 sps:$4 sm:$0xff]   ;;  %v959_v41 = vld [vmem:[#allocation8 + $0x2c] ss:$16 sps:$4 sm:$0xff]   ;;  %v954_v42 = vld [vmem:[#allocation8 + $0x20] ss:$16 sps:$4 sm:$0xff]  }
  0x7c   :  { %v957_v43 = vld [vmem:[#allocation8 + $0x28] ss:$16 sps:$4 sm:$0xff]   ;;  %v962_v44 = vld [vmem:[#allocation8 + $0x44] ss:$16 sps:$4 sm:$0xff]   ;;  %v965_v45 = vld [vmem:[#allocation8 + $0x4c] ss:$16 sps:$4 sm:$0xff]  }
  0x7d   :  { %345 = vmatpush1.bf16.msra.mxu0 %v922_v15  ;;  %388 = vmatpush1.bf16.msra.mxu1 %v923_v16  ;;  %v960_v46 = vld [vmem:[#allocation8 + $0x40] ss:$16 sps:$4 sm:$0xff]   ;;  %v963_v47 = vld [vmem:[#allocation8 + $0x48] ss:$16 sps:$4 sm:$0xff]   ;;  %v968_v48 = vld [vmem:[#allocation8 + $0x64] ss:$16 sps:$4 sm:$0xff]  }
  0x7e   :  { %346 = vmatprep.subr.bf16.mxu0 %v924_v17  ;;  %389 = vmatprep.subr.bf16.mxu1 %v926_v18  ;;  %v971_v49 = vld [vmem:[#allocation8 + $0x6c] ss:$16 sps:$4 sm:$0xff]   ;;  %v966_v50 = vld [vmem:[#allocation8 + $0x60] ss:$16 sps:$4 sm:$0xff]   ;;  %v969_v51 = vld [vmem:[#allocation8 + $0x68] ss:$16 sps:$4 sm:$0xff]  }
  0x7f   :  { %v974_v52 = vld [vmem:[#allocation8 + $0x84] ss:$16 sps:$4 sm:$0xff]   ;;  %v977_v53 = vld [vmem:[#allocation8 + $0x8c] ss:$16 sps:$4 sm:$0xff]   ;;  %v972_v54 = vld [vmem:[#allocation8 + $0x80] ss:$16 sps:$4 sm:$0xff]  }
  0x80   :  { %v975_v55 = vld [vmem:[#allocation8 + $0x88] ss:$16 sps:$4 sm:$0xff]   ;;  %v980_v56 = vld [vmem:[#allocation8 + $0xa4] ss:$16 sps:$4 sm:$0xff]   ;;  %v983_v57 = vld [vmem:[#allocation8 + $0xac] ss:$16 sps:$4 sm:$0xff]  }
  0x81   :  { %347 = vmatpush1.bf16.msra.mxu0 %v928_v19  ;;  %390 = vmatpush1.bf16.msra.mxu1 %v929_v20  ;;  %v978_v58 = vld [vmem:[#allocation8 + $0xa0] ss:$16 sps:$4 sm:$0xff]   ;;  %v981_v59 = vld [vmem:[#allocation8 + $0xa8] ss:$16 sps:$4 sm:$0xff]   ;;  %v986_v60 = vld [vmem:[#allocation8 + $0xc4] ss:$16 sps:$4 sm:$0xff]  }
  0x82   :  { %348 = vmatprep.subr.bf16.mxu0 %v930_v21  ;;  %391 = vmatprep.subr.bf16.mxu1 %v932_v22  ;;  %v989_v61 = vld [vmem:[#allocation8 + $0xcc] ss:$16 sps:$4 sm:$0xff]   ;;  %v984_v62 = vld [vmem:[#allocation8 + $0xc0] ss:$16 sps:$4 sm:$0xff]   ;;  %v987_v63 = vld [vmem:[#allocation8 + $0xc8] ss:$16 sps:$4 sm:$0xff]  }
  0x83   :  { %v995_v1 = vld [vmem:[#allocation8 + $0xec] ss:$16 sps:$4 sm:$0xff]   ;;  %v990_v2 = vld [vmem:[#allocation8 + $0xe0] ss:$16 sps:$4 sm:$0xff]   ;;  %v993_v3 = vld [vmem:[#allocation8 + $0xe8] ss:$16 sps:$4 sm:$0xff]  }
  0x84   :  { %v108_v4 = vld [vmem:[#allocation2] sm:$0xff]  ;;  %v109_v5 = vld [vmem:[#allocation2 + $0x8] sm:$0xff]  ;;  %v674_v9 = vsub.s32 0, %v673_v8  ;;  %v678_v11 = vsub.s32 1, %v673_v8  ;;  %v686_v16 = vsub.s32 3, %v673_v8  ;;  %s1227_s5 = smov [#allocation14]  }
  0x85   :  { %349 = vmatpush1.bf16.msra.mxu0 %v934_v23  ;;  %392 = vmatpush1.bf16.msra.mxu1 %v935_v24  ;;  %v110_v6 = vpack.c.bf16 %v109_v5, %v108_v4  ;;  %v670_v10 = vld [vmem:[#allocation11] ss:$8 sm:$0xf]  ;;  %v682_v24 = vsub.s32 2, %v673_v8  ;;  %s779_s25 = sshll.u32 %s1227_s5, 4  ;;  %s780_s25 = int_to_ptr.vmem [resolvable:$true] %s779_s25 }
  0x86   :  { %350 = vmatprep.subr.bf16.mxu0 %v936_v25  ;;  %393 = vmatprep.subr.bf16.mxu1 %v938_v26  ;;  %v675_v12 = vrot.slane %v670_v10, %v674_v9  ;;  %v679_v13 = vrot.slane %v670_v10, %v678_v11  ;;  %s1160_s30 = scalar_lea.vmem %s780_s25, 256  ;;  %p1165_p7 = scmp.lt.s32.totalorder %s780_s25, %s780_s25 }
  0x87   :  { %v683_v33 = vrot.slane %v670_v10, %v682_v24  ;;  %p1161_p6 = scmp.ne.s32.totalorder %s780_s25, %s1160_s30  ;;  %p1166_p8 = scmp.lt.s32.totalorder %s1160_s30, %s1160_s30 }
  0x89   :  { %351 = vmatpush1.bf16.msra.mxu0 %v940_v27  ;;  %394 = vmatpush1.bf16.msra.mxu1 %v941_v28  ;;  %p1167_p9 = por %p1166_p8, %p1165_p7 }
  0x8a   :  { %352 = vmatprep.subr.bf16.mxu0 %v942_v29  ;;  %395 = vmatprep.subr.bf16.mxu1 %v944_v30  ;;  %v687_v29 = vrot.slane %v670_v10, %v686_v16 }
  0x8b   :  { %p1168_p10 = pnand %p1167_p9, %p1161_p6 }
  0x8d   :  { %353 = vmatpush1.bf16.msra.mxu0 %v946_v31  ;;  %396 = vmatpush1.bf16.msra.mxu1 %v947_v32 }
  0x8e   :  { %584 = vmatprep.subr.bf16.mxu0 %v950_v35  ;;  %627 = vmatprep.subr.bf16.mxu1 %v953_v36 }
  0x90   :  { %371 = vmatmul.mubr.bf16.vlgmr.msra.gmra.mrb[0].mxu0 %v113_v37  ;;  %414 = vmatmul.mubr.bf16.vlgmr.msra.gmra.mrb[0].mxu1 %v113_v37 }
  0x91   :  { %585 = vmatpush1.bf16.msra.mxu0 %v948_v38  ;;  %628 = vmatpush1.bf16.msra.mxu1 %v951_v39 }
  0x92   :  { %586 = vmatprep.subr.bf16.mxu0 %v956_v40  ;;  %629 = vmatprep.subr.bf16.mxu1 %v959_v41 }
  0x93   :  { %616 = vmatprep.mubr.bf16.mxu0 %v1226_v0  ;;  %659 = vmatprep.mubr.bf16.mxu1 %v1226_v0  ;;  %v992_v0 = vld [vmem:[#allocation8 + $0xe4] ss:$16 sps:$4 sm:$0xff]  }
  0x95   :  { %587 = vmatpush1.bf16.msra.mxu0 %v954_v42  ;;  %630 = vmatpush1.bf16.msra.mxu1 %v957_v43 }
  0x96   :  { %588 = vmatprep.subr.bf16.mxu0 %v962_v44  ;;  %631 = vmatprep.subr.bf16.mxu1 %v965_v45 }
  0x99   :  { %589 = vmatpush1.bf16.msra.mxu0 %v960_v46  ;;  %632 = vmatpush1.bf16.msra.mxu1 %v963_v47 }
  0x9a   :  { %590 = vmatprep.subr.bf16.mxu0 %v968_v48  ;;  %633 = vmatprep.subr.bf16.mxu1 %v971_v49 }
  0x9d   :  { %591 = vmatpush1.bf16.msra.mxu0 %v966_v50  ;;  %634 = vmatpush1.bf16.msra.mxu1 %v969_v51  ;;  %v738_v51 = vld [vmem:[#allocation7] sm:$0xff] }
  0x9e   :  { %592 = vmatprep.subr.bf16.mxu0 %v974_v52  ;;  %635 = vmatprep.subr.bf16.mxu1 %v977_v53 }
  0xa1   :  { %593 = vmatpush1.bf16.msra.mxu0 %v972_v54  ;;  %636 = vmatpush1.bf16.msra.mxu1 %v975_v55 }
  0xa2   :  { %594 = vmatprep.subr.bf16.mxu0 %v980_v56  ;;  %637 = vmatprep.subr.bf16.mxu1 %v983_v57 }
  0xa5   :  { %595 = vmatpush1.bf16.msra.mxu0 %v978_v58  ;;  %638 = vmatpush1.bf16.msra.mxu1 %v981_v59  ;;  %v739_v59 = vld [vmem:[#allocation7 + $0x8] sm:$0xff] }
  0xa6   :  { %596 = vmatprep.subr.bf16.mxu0 %v986_v60  ;;  %639 = vmatprep.subr.bf16.mxu1 %v989_v61 }
  0xa9   :  { %597 = vmatpush1.bf16.msra.mxu0 %v984_v62  ;;  %640 = vmatpush1.bf16.msra.mxu1 %v987_v63 }
  0xaa   :  { %598 = vmatprep.subr.bf16.mxu0 %v992_v0  ;;  %641 = vmatprep.subr.bf16.mxu1 %v995_v1 }
  0xad   :  { %599 = vmatpush1.bf16.msra.mxu0 %v990_v2  ;;  %642 = vmatpush1.bf16.msra.mxu1 %v993_v3 }
  0xb0   :  { %617 = vmatmul.mubr.bf16.vlgmr.msra.gmra.mrb[0].mxu0 %v110_v6  ;;  %660 = vmatmul.mubr.bf16.vlgmr.msra.gmra.mrb[0].mxu1 %v110_v6 }
 0x183   :  { %v618_v14 = vpop.f32.mrb[0].mxu0  ;;  %v661_v15 = vpop.f32.mrb[0].mxu1 }
 0x184   :  { %v692_v17 = vadd.f32 %v675_v12, %v618_v14  ;;  %v620_v18 = vpop.f32.mrb[1].mxu0  ;;  %v663_v19 = vpop.f32.mrb[1].mxu1  ;;  %v694_v35 = vadd.f32 %v683_v33, %v661_v15 }
 0x185   :  { %v693_v20 = vadd.f32 %v679_v13, %v620_v18  ;;  %v622_v21 = vpop.f32.mrb[2].mxu0  ;;  %v665_v22 = vpop.f32.mrb[2].mxu1  ;;  %v695_v34 = vadd.f32 %v687_v29, %v663_v19 }
 0x186   :  { %v862_v23 = vmul.f32 -1.442695, %v692_v17  ;;  %v696_v25 = vadd.f32 %v675_v12, %v622_v21  ;;  %v624_v26 = vpop.f32.mrb[3].mxu0  ;;  %v667_v27 = vpop.f32.mrb[3].mxu1  ;;  %v698_v38 = vadd.f32 %v683_v33, %v665_v22 }
 0x187   :  { %v863_v28 = vmul.f32 -1.442695, %v693_v20  ;;  %v697_v30 = vadd.f32 %v679_v13, %v624_v26  ;;  %v866_v36 = vmul.f32 -1.442695, %v695_v34  ;;  %v699_v37 = vadd.f32 %v687_v29, %v667_v27 }
 0x188   :  { %996 = vpow2.f32 %v862_v23  ;;  %v864_v31 = vmul.f32 -1.442695, %v696_v25 }
 0x189   :  { %998 = vpow2.f32 %v863_v28  ;;  %v865_v32 = vmul.f32 -1.442695, %v697_v30  ;;  %v867_v42 = vmul.f32 -1.442695, %v699_v37 }
 0x18a   :  { %1000 = vpow2.f32 %v864_v31 }
 0x18b   :  { %1002 = vpow2.f32 %v865_v32 }
 0x18c   :  { %1004 = vtanh.f32 %v694_v35 }
 0x18d   :  { %1006 = vpow2.f32 %v866_v36 }
 0x18e   :  { %1008 = vtanh.f32 %v698_v38 }
 0x192   :  { %v997_v39 = vpop.eup %996 }
 0x193   :  { %v999_v40 = vpop.eup %998  ;;  %v712_v41 = vadd.f32 1.0, %v997_v39 }
 0x194   :  { %v713_v43 = vadd.f32 1.0, %v999_v40  ;;  %v1001_v44 = vpop.eup %1000 }
 0x195   :  { %1010 = vrcp.f32 %v712_v41  ;;  %v714_v45 = vadd.f32 1.0, %v1001_v44  ;;  %v1003_v46 = vpop.eup %1002 }
 0x196   :  { %1012 = vrcp.f32 %v713_v43  ;;  %v715_v47 = vadd.f32 1.0, %v1003_v46  ;;  %v1005_v48 = vpop.eup %1004 }
 0x197   :  { %1014 = vpow2.f32 %v867_v42  ;;  %v1007_v49 = vpop.eup %1006 }
 0x198   :  { %1016 = vrcp.f32 %v714_v45  ;;  %v1009_v50 = vpop.eup %1008  ;;  %v732_v55 = vadd.f32 1.0, %v1007_v49 }
 0x199   :  { %1018 = vrcp.f32 %v715_v47 }
 0x19a   :  { %1020 = vrcp.f32 %v732_v55 }
 0x19f   :  { %v1011_v52 = vpop.eup %1010 }
 0x1a0   :  { %v1013_v53 = vpop.eup %1012  ;;  %v742_v54 = vmul.f32 %v1011_v52, %v1005_v48 }
 0x1a1   :  { %v1015_v56 = vpop.eup %1014  ;;  %v740_v57 = vmul.f32 %v1013_v53, %v738_v51 }
 0x1a2   :  { %v1017_v58 = vpop.eup %1016  ;;  %v733_v63 = vadd.f32 1.0, %v1015_v56 }
 0x1a3   :  { %v744_v60 = vadd.f32 %v742_v54, %v740_v57  ;;  %v743_v61 = vmul.f32 %v1017_v58, %v1009_v50  ;;  %v1019_v62 = vpop.eup %1018 }
 0x1a4   :  { %v741_v0 = vmul.f32 %v1019_v62, %v739_v59 }
 0x1a5   :  { %1022 = vtanh.f32 %v744_v60  ;;  %750 = vst [vmem:[#allocation14] sm:$0xff] %v744_v60 }
 0x1a6   :  { %v745_v1 = vadd.f32 %v743_v61, %v741_v0  ;;  %1024 = vrcp.f32 %v733_v63 }
 0x1a8   :  { %1026 = vtanh.f32 %v745_v1  ;;  %751 = vst [vmem:[#allocation14 + $0x8] sm:$0xff] %v745_v1 }
 0x1a9   :  { %1171 = shalt.err (!%p1168_p10)
}
 0x1aa   :  { %s1172_s11 = scalar_lea.hbm %s1410_s7, 256 }
 0x1ab   :  { %p1173_p11 = scmp.ne.s32.totalorder %s1410_s7, %s1172_s11  ;;  %p1176_p12 = scmp.lt.u32.totalorder %s1172_s11, %s1410_s7 }
 0x1ad   :  { %p1178_p13 = pnand %p1176_p12, %p1173_p11 }
 0x1af   :  { %1181 = shalt.err (!%p1178_p13)
}
 0x1b0   :  { %785 = dma.vmem_to_hbm [thread:$0]  %s780_s25, 256, %s1410_s7, [#allocation15], %s1218_s13, %s1218_s13, %s1219_s14   ;;  %v1021_v2 = vpop.eup %1020 }
 0x1b1   :  { %v1023_v3 = vpop.eup %1022  ;;  %s1228_s27 = smov [#allocation13]  }
 0x1b2   :  { %v748_v4 = vmul.f32 %v1023_v3, %v1021_v2  ;;  %v1025_v5 = vpop.eup %1024  ;;  %s767_s19 = sshll.u32 %s1228_s27, 4  ;;  %s768_s19 = int_to_ptr.vmem [resolvable:$true] %s767_s19 }
 0x1b3   :  { %v1027_v6 = vpop.eup %1026  ;;  %s1182_s2 = scalar_lea.vmem %s768_s19, 128  ;;  %p1187_p1 = scmp.lt.s32.totalorder %s768_s19, %s768_s19 }
 0x1b4   :  { %v749_v7 = vmul.f32 %v1027_v6, %v1025_v5  ;;  %p1183_p0 = scmp.ne.s32.totalorder %s768_s19, %s1182_s2  ;;  %p1188_p2 = scmp.lt.s32.totalorder %s1182_s2, %s1182_s2 }
 0x1b6   :  { %v875_v8 = vpack.c.bf16 %v749_v7, %v748_v4  ;;  %p1189_p3 = por %p1188_p2, %p1187_p1 }
 0x1b8   :  { %876 = vst [vmem:[#allocation13] sm:$0xff] %v875_v8   ;;  %p1190_p4 = pnand %p1189_p3, %p1183_p0 }
 0x1ba   :  { %1193 = shalt.err (!%p1190_p4)
}
 0x1bb   :  { %s1194_s13 = scalar_lea.hbm %s1409_s6, 128 }
 0x1bc   :  { %p1195_p5 = scmp.ne.s32.totalorder %s1409_s6, %s1194_s13  ;;  %p1198_p6 = scmp.lt.u32.totalorder %s1194_s13, %s1409_s6 }
 0x1be   :  { %p1200_p7 = pnand %p1198_p6, %p1195_p5 }
 0x1c0   :  { %1203 = shalt.err (!%p1200_p7)
}
 0x1c1   :  { %s1229_s23 = smov 64   ;;  %s1230_s24 = smov 4  }
 0x1c2   :  { %773 = dma.vmem_to_hbm [thread:$0]  %s768_s19, 128, %s1409_s6, [#allocation4], %s1229_s23, %s1229_s23, %s1230_s24  }
 0x1c3   :  { %1212 = dma.done.wait [#allocation4], 128  }
 0x1c4   :  { %1213 = vsyncadd [#allocation4], 4294967168 }
 0x1c5   :  { %1214 = dma.done.wait [#allocation15], 256  }
 0x1c6   :  { %1215 = vsyncadd [#allocation15], 4294967040 }
 0x1c7   :  { %792 = vsyncpa [#allocation3], 1 }
 0x1c8   :  { %793 = vsyncpa [#allocation6], 1 }
 0x1c9   :  { %794 = vsyncpa [#allocation9], 1 }
 0x1ca   :  { %795 = vsyncpa [#allocation12], 1 }
 0x1cb   :  { %796 = vsyncpa [#allocation4], 1 }
 0x1cc   :  { %797 = vsyncpa [#allocation15], 1 }

</bundles_post_ra>
